<compile_context>
chip_gen: v6e
topology: v6e:2x2x1
jax: 0.10.0
libtpu: 0.0.40
codegen_flags: <defaults>
</compile_context>

<pallas_src>
import functools

import jax
import jax.numpy as jnp
import numpy as np
from jax import lax
from jax.experimental import pallas as pl
from jax.experimental.pallas import tpu as pltpu

_LANES = 128
_SUBLANES = 8
_BLOCK_BYTES_TARGET = 7 * 1024 * 1024   # logits bytes streamed per grid step
_MAX_TILE_ROWS = 2048                   # 2048 rows x 128 lanes = 256K pixels / step
_UNROLL_CLASS_LIMIT = 16                # beyond this, fori_loop over classes
_PACK_BIT = 16                          # TP count lives in the high 16 bits
_PACK_MAX = (1 << _PACK_BIT) - 1


def _seg_precision_kernel(preds_ref, tgt_ref, acc_ref, *, num_classes, tile_rows,
                          acc_rows, tiles_per_split, hw, need_mask):
    """One (batch, split, pixel-tile) step.

    preds_ref: (num_classes, tile_rows, 128) logits (producer dtype)
    tgt_ref:   (tile_rows, 128) int32 labels
    acc_ref:   (num_classes, acc_rows, 128) int32 packed counts
               low 16 bits: predicted-positive, high 16 bits: true-positive.
    """
    si = pl.program_id(1)
    ti = pl.program_id(2)

    @pl.when(ti == 0)
    def _():
        acc_ref[...] = jnp.zeros_like(acc_ref)

    # ---- per-pixel argmax over the class (major) axis: running VPU max ----
    zero_pred = jnp.zeros((tile_rows, _LANES), jnp.int32)
    if num_classes <= _UNROLL_CLASS_LIMIT:
        mx = preds_ref[0]
        pred = zero_pred
        for cls in range(1, num_classes):
            pc = preds_ref[cls]
            gt = pc > mx                       # strict '>' keeps the first max
            pred = jnp.where(gt, cls, pred)
            mx = jnp.where(gt, pc, mx)
    else:
        # Large-C path: modestly unrolled fori_loop keeps live ranges bounded.
        def amax_body(cls, carry):
            mx, pred = carry
            pc = preds_ref[cls]
            gt = pc > mx
            return jnp.where(gt, pc, mx), jnp.where(gt, cls, pred)

        _, pred = lax.fori_loop(1, num_classes, amax_body,
                                (preds_ref[0], zero_pred), unroll=4)

    # ---- fold validity (grid overhang / HW padding) into pred ONCE ----
    if need_mask:
        row0 = (si * tiles_per_split + ti) * tile_rows
        rows = lax.broadcasted_iota(jnp.int32, (tile_rows, _LANES), 0) + row0
        if hw % _LANES == 0:
            valid = rows < (hw // _LANES)
        else:
            cols = lax.broadcasted_iota(jnp.int32, (tile_rows, _LANES), 1)
            valid = rows * _LANES + cols < hw
        pred = jnp.where(valid, pred, -1)      # -1 never matches any class

    # ---- packed per-class counting ----
    # base: +1 in the PP (low) half always, +1 in the TP (high) half iff correct.
    correct = tgt_ref[...] == pred
    base = jnp.where(correct, jnp.int32((1 << _PACK_BIT) | 1), jnp.int32(1))

    groups = tile_rows // acc_rows
    if groups > 1:
        # Free layout reinterpret (acc_rows is a multiple of 8, or == tile_rows),
        # hoisted out of the class loop.
        pred_g = pred.reshape(groups, acc_rows, _LANES)
        base_g = base.reshape(groups, acc_rows, _LANES)
    else:
        pred_g, base_g = pred, base

    def accumulate(cls):
        contrib = jnp.where(pred_g == cls, base_g, 0)
        part = jnp.sum(contrib, axis=0) if groups > 1 else contrib
        acc_ref[cls] = acc_ref[cls] + part

    if num_classes <= _UNROLL_CLASS_LIMIT:
        for cls in range(num_classes):
            accumulate(cls)
    else:
        def cnt_body(cls, carry):
            accumulate(cls)
            return carry

        lax.fori_loop(0, num_classes, cnt_body, jnp.int32(0), unroll=4)


def _pick_tile_rows(num_classes, total_rows, itemsize):
    rows = _BLOCK_BYTES_TARGET // (num_classes * _LANES * itemsize)
    rows = max(_SUBLANES, min(_MAX_TILE_ROWS, rows))
    rows -= rows % _SUBLANES
    rows = max(rows, _SUBLANES)
    if total_rows <= rows:
        return total_rows          # single tile along pixels: full-dim block
    return rows                    # multiple of 8 -> legal sublane block dim


@functools.partial(jax.jit, static_argnames=("num_classes",))
def seg_precision_metric(preds, target, *, num_classes):
    """preds: (B, C, H, W) float logits; target: (B, H, W) int labels in [0, C)."""
    if preds.ndim != 4:
        # TODO(synk): 3-D preds path (already-argmaxed label maps) not implemented.
        raise NotImplementedError("only 4-D logits preds supported")
    b, c, h, w = preds.shape
    assert c == num_classes
    hw = h * w

    # Keep the producer dtype for logits (f32/bf16/f16): logits dominate HBM
    # traffic, so no forced f32 upcast pass.
    if preds.dtype not in (jnp.float32, jnp.bfloat16, jnp.float16):
        preds = preds.astype(jnp.float32)
    preds3 = preds.reshape(b, c, hw)                 # free: NCHW is contiguous

    tgt2 = target.reshape(b, hw)
    if tgt2.dtype != jnp.int32:                      # no-op when caller passes int32
        tgt2 = tgt2.astype(jnp.int32)

    hw_pad = -(-hw // _LANES) * _LANES
    if hw_pad != hw:
        # Rare path (H*W not a multiple of 128).  A "bulk slice + tail epilogue"
        # would still materialize a near-full-tensor copy for the (rows,128)
        # reshape, so the pad copy is kept; pad pixels are masked in-kernel.
        # TODO(synk): a lane-raw (B,C,HW) block layout would remove this copy.
        preds3 = jnp.pad(preds3, ((0, 0), (0, 0), (0, hw_pad - hw)))
        tgt2 = jnp.pad(tgt2, ((0, 0), (0, hw_pad - hw)))

    total_rows = hw_pad // _LANES
    preds4 = preds3.reshape(b, c, total_rows, _LANES)
    tgt3 = tgt2.reshape(b, total_rows, _LANES)

    tile_rows = _pick_tile_rows(num_classes, total_rows, preds4.dtype.itemsize)
    num_tiles = -(-total_rows // tile_rows)

    # Give a v7x megacore >= 2 independent "parallel" units even when B == 1 by
    # splitting the pixel-tile axis in two, each half owning its own output slab.
    # Plain "parallel" semantics (not CORE_PARALLEL) so the same kernel lowers on
    # single-TensorCore v5e/v6e, where the split is just one extra cheap loop axis.
    nsplit = 2 if (b == 1 and num_tiles >= 2) else 1
    tiles_per_split = -(-num_tiles // nsplit)

    # Packed 16-bit-per-half ceiling: each output cell receives at most
    # tiles_per_split * (tile_rows // acc_rows) increments per half.  Widen
    # acc_rows (fewer increments per cell) if a gigantic image could overflow.
    acc_rows = _SUBLANES if tile_rows % _SUBLANES == 0 else tile_rows
    if tiles_per_split * (tile_rows // acc_rows) > _PACK_MAX:
        acc_rows = tile_rows
    assert tiles_per_split <= _PACK_MAX, "image too large for packed PP/TP counts"

    need_mask = (hw % _LANES != 0) or (nsplit * tiles_per_split * tile_rows != total_rows)
    clamp_tiles = nsplit * tiles_per_split != num_tiles   # keep block indices in range

    def tile_index(si, ti):
        idx = si * tiles_per_split + ti
        # Clamp the (masked-out) overhang tile of the second half onto the last
        # real tile so no DMA ever addresses past the array.
        return jnp.minimum(idx, num_tiles - 1) if clamp_tiles else idx

    kernel = functools.partial(
        _seg_precision_kernel, num_classes=num_classes, tile_rows=tile_rows,
        acc_rows=acc_rows, tiles_per_split=tiles_per_split, hw=hw,
        need_mask=need_mask)

    grid = (b, nsplit, tiles_per_split)
    out_shape = jax.ShapeDtypeStruct((b, nsplit, num_classes, acc_rows, _LANES),
                                     jnp.int32)
    out_spec = pl.BlockSpec(
        (pl.Squeezed(), pl.Squeezed(), num_classes, acc_rows, _LANES),
        lambda bi, si, ti: (bi, si, 0, 0, 0))
    in_specs = [
        pl.BlockSpec((pl.Squeezed(), num_classes, tile_rows, _LANES),
                     lambda bi, si, ti: (bi, 0, tile_index(si, ti), 0)),
        pl.BlockSpec((pl.Squeezed(), tile_rows, _LANES),
                     lambda bi, si, ti: (bi, tile_index(si, ti), 0)),
    ]

    bytes_accessed = (b * num_classes * hw_pad * preds4.dtype.itemsize
                      + b * hw_pad * 4
                      + b * nsplit * num_classes * acc_rows * _LANES * 4)
    cost = pl.CostEstimate(flops=7 * b * hw_pad * num_classes, transcendentals=0,
                           bytes_accessed=bytes_accessed)

    acc = pl.pallas_call(
        kernel,
        out_shape=out_shape,
        grid_spec=pltpu.PrefetchScalarGridSpec(
            num_scalar_prefetch=0,
            grid=grid,
            in_specs=in_specs,
            out_specs=out_spec,
        ),
        compiler_params=pltpu.CompilerParams(
            dimension_semantics=("parallel", "parallel", "arbitrary"),
            vmem_limit_bytes=40 * 1024 * 1024),
        cost_estimate=cost,
    )(preds4, tgt3)

    pp = jnp.sum(acc & _PACK_MAX, axis=(0, 1, 3, 4))
    tp = jnp.sum((acc >> _PACK_BIT) & _PACK_MAX, axis=(0, 1, 3, 4))
    # TODO(synk): no ignore_index support (the original module does not set one).
    return jnp.where(pp > 0,
                     tp.astype(jnp.float32) / jnp.maximum(pp, 1).astype(jnp.float32),
                     jnp.float32(0))


def _reference(preds, target, num_classes):
    pred_label = jnp.argmax(preds, axis=1).reshape(-1)
    t = target.reshape(-1)
    out = []
    for k in range(num_classes):
        pp = jnp.sum(pred_label == k)
        tp = jnp.sum((pred_label == k) & (t == k))
        out.append(jnp.where(pp > 0, tp / jnp.maximum(pp, 1), 0.0))
    return jnp.stack(out).astype(jnp.float32)


if __name__ == "__main__":
    B, C, H, W = 2, 4, 16, 16
    key = jax.random.PRNGKey(0)
    k1, k2 = jax.random.split(key)
    preds = jax.random.normal(k1, (B, C, H, W), dtype=jnp.float32)
    target = jax.random.randint(k2, (B, H, W), 0, C, dtype=jnp.int32)

    result = seg_precision_metric(preds, target, num_classes=C)
    jax.block_until_ready(result)

    ref = _reference(preds, target, C)
    np.testing.assert_allclose(np.asarray(result), np.asarray(ref), rtol=1e-6, atol=1e-6)
    print("KERNEL_OK")
</pallas_src>

<mosaic_0001>
module attributes {stable_mosaic.version = 11 : i64} {
  func.func @_seg_precision_kernel(%arg0: i32, %arg1: i32, %arg2: i32, %arg3: memref<1x4x2x128xf32, #tpu.memory_space<vmem>>, %arg4: memref<1x2x128xi32, #tpu.memory_space<vmem>>, %arg5: memref<1x1x4x2x128xi32, #tpu.memory_space<vmem>>) attributes {dimension_semantics = [#tpu.dimension_semantics<parallel>, #tpu.dimension_semantics<parallel>, #tpu.dimension_semantics<arbitrary>], iteration_bounds = array<i64: 2, 1, 1>, scalar_prefetch = 0 : i64, scratch_operands = 0 : i64, tpu.core_type = #tpu.core_type<tc>, window_params = [{transform_indices = @transform_0, window_bounds = array<i64: 1, 4, 2, 128>}, {transform_indices = @transform_1, window_bounds = array<i64: 1, 2, 128>}, {transform_indices = @transform_2, window_bounds = array<i64: 1, 1, 4, 2, 128>}]} {
    %c0_i32 = arith.constant 0 : i32
    %0 = arith.cmpi eq, %arg2, %c0_i32 : i32
    %1 = arith.extui %0 : i1 to i32
    %c0_i32_0 = arith.constant 0 : i32
    %2 = arith.cmpi ne, %1, %c0_i32_0 : i32
    scf.if %2 {
      %c0_i32_66 = arith.constant 0 : i32
      %69 = vector.broadcast %c0_i32_66 : i32 to vector<4x2x128xi32>
      %c0_67 = arith.constant 0 : index
      %c0_68 = arith.constant 0 : index
      %c0_69 = arith.constant 0 : index
      %c0_70 = arith.constant 0 : index
      %c0_71 = arith.constant 0 : index
      %70 = vector.load %arg5[%c0_67, %c0_68, %c0_69, %c0_70, %c0_71] : memref<1x1x4x2x128xi32, #tpu.memory_space<vmem>>, vector<1x1x4x2x128xi32>
      %71 = vector.shape_cast %70 : vector<1x1x4x2x128xi32> to vector<4x2x128xi32>
      %72 = vector.shape_cast %69 : vector<4x2x128xi32> to vector<1x1x4x2x128xi32>
      tpu.vector_store %arg5[%c0_67, %c0_68, %c0_69, %c0_70, %c0_71], %72 {strides = array<i32>} : memref<1x1x4x2x128xi32, #tpu.memory_space<vmem>>, vector<1x1x4x2x128xi32>,
    } else {
    }
    %c0_i32_1 = arith.constant 0 : i32
    %3 = vector.broadcast %c0_i32_1 : i32 to vector<2x128xi32>
    %c0 = arith.constant 0 : index
    %c0_2 = arith.constant 0 : index
    %c0_3 = arith.constant 0 : index
    %c0_4 = arith.constant 0 : index
    %4 = vector.load %arg3[%c0, %c0_2, %c0_3, %c0_4] : memref<1x4x2x128xf32, #tpu.memory_space<vmem>>, vector<1x1x2x128xf32>
    %5 = vector.shape_cast %4 : vector<1x1x2x128xf32> to vector<2x128xf32>
    %c0_5 = arith.constant 0 : index
    %c1 = arith.constant 1 : index
    %c0_6 = arith.constant 0 : index
    %c0_7 = arith.constant 0 : index
    %6 = vector.load %arg3[%c0_5, %c1, %c0_6, %c0_7] : memref<1x4x2x128xf32, #tpu.memory_space<vmem>>, vector<1x1x2x128xf32>
    %7 = vector.shape_cast %6 : vector<1x1x2x128xf32> to vector<2x128xf32>
    %8 = arith.cmpf ogt, %7, %5 : vector<2x128xf32>
    %c1_i32 = arith.constant 1 : i32
    %9 = vector.broadcast %c1_i32 : i32 to vector<2x128xi32>
    %10 = arith.select %8, %9, %3 : vector<2x128xi1>, vector<2x128xi32>
    %11 = arith.select %8, %7, %5 : vector<2x128xi1>, vector<2x128xf32>
    %c0_8 = arith.constant 0 : index
    %c2 = arith.constant 2 : index
    %c0_9 = arith.constant 0 : index
    %c0_10 = arith.constant 0 : index
    %12 = vector.load %arg3[%c0_8, %c2, %c0_9, %c0_10] : memref<1x4x2x128xf32, #tpu.memory_space<vmem>>, vector<1x1x2x128xf32>
    %13 = vector.shape_cast %12 : vector<1x1x2x128xf32> to vector<2x128xf32>
    %14 = arith.cmpf ogt, %13, %11 : vector<2x128xf32>
    %c2_i32 = arith.constant 2 : i32
    %15 = vector.broadcast %c2_i32 : i32 to vector<2x128xi32>
    %16 = arith.select %14, %15, %10 : vector<2x128xi1>, vector<2x128xi32>
    %17 = arith.select %14, %13, %11 : vector<2x128xi1>, vector<2x128xf32>
    %c0_11 = arith.constant 0 : index
    %c3 = arith.constant 3 : index
    %c0_12 = arith.constant 0 : index
    %c0_13 = arith.constant 0 : index
    %18 = vector.load %arg3[%c0_11, %c3, %c0_12, %c0_13] : memref<1x4x2x128xf32, #tpu.memory_space<vmem>>, vector<1x1x2x128xf32>
    %19 = vector.shape_cast %18 : vector<1x1x2x128xf32> to vector<2x128xf32>
    %20 = arith.cmpf ogt, %19, %17 : vector<2x128xf32>
    %c3_i32 = arith.constant 3 : i32
    %21 = vector.broadcast %c3_i32 : i32 to vector<2x128xi32>
    %22 = arith.select %20, %21, %16 : vector<2x128xi1>, vector<2x128xi32>
    %c0_14 = arith.constant 0 : index
    %c0_15 = arith.constant 0 : index
    %c0_16 = arith.constant 0 : index
    %23 = vector.load %arg4[%c0_14, %c0_15, %c0_16] : memref<1x2x128xi32, #tpu.memory_space<vmem>>, vector<1x2x128xi32>
    %24 = vector.shape_cast %23 : vector<1x2x128xi32> to vector<2x128xi32>
    %25 = arith.cmpi eq, %24, %22 : vector<2x128xi32>
    %c65537_i32 = arith.constant 65537 : i32
    %c1_i32_17 = arith.constant 1 : i32
    %26 = vector.broadcast %c65537_i32 : i32 to vector<2x128xi32>
    %27 = vector.broadcast %c1_i32_17 : i32 to vector<2x128xi32>
    %28 = arith.select %25, %26, %27 : vector<2x128xi1>, vector<2x128xi32>
    %c0_i32_18 = arith.constant 0 : i32
    %29 = vector.broadcast %c0_i32_18 : i32 to vector<2x128xi32>
    %30 = arith.cmpi eq, %22, %29 : vector<2x128xi32>
    %c0_i32_19 = arith.constant 0 : i32
    %31 = vector.broadcast %c0_i32_19 : i32 to vector<2x128xi32>
    %32 = arith.select %30, %28, %31 : vector<2x128xi1>, vector<2x128xi32>
    %c0_20 = arith.constant 0 : index
    %c0_21 = arith.constant 0 : index
    %c0_22 = arith.constant 0 : index
    %c0_23 = arith.constant 0 : index
    %c0_24 = arith.constant 0 : index
    %33 = vector.load %arg5[%c0_20, %c0_21, %c0_22, %c0_23, %c0_24] : memref<1x1x4x2x128xi32, #tpu.memory_space<vmem>>, vector<1x1x1x2x128xi32>
    %34 = vector.shape_cast %33 : vector<1x1x1x2x128xi32> to vector<2x128xi32>
    %35 = arith.addi %34, %32 : vector<2x128xi32>
    %c0_25 = arith.constant 0 : index
    %c0_26 = arith.constant 0 : index
    %c0_27 = arith.constant 0 : index
    %c0_28 = arith.constant 0 : index
    %c0_29 = arith.constant 0 : index
    %36 = vector.load %arg5[%c0_25, %c0_26, %c0_27, %c0_28, %c0_29] : memref<1x1x4x2x128xi32, #tpu.memory_space<vmem>>, vector<1x1x1x2x128xi32>
    %37 = vector.shape_cast %36 : vector<1x1x1x2x128xi32> to vector<2x128xi32>
    %38 = vector.shape_cast %35 : vector<2x128xi32> to vector<1x1x1x2x128xi32>
    tpu.vector_store %arg5[%c0_25, %c0_26, %c0_27, %c0_28, %c0_29], %38 {strides = array<i32>} : memref<1x1x4x2x128xi32, #tpu.memory_space<vmem>>, vector<1x1x1x2x128xi32>,
    %c1_i32_30 = arith.constant 1 : i32
    %39 = vector.broadcast %c1_i32_30 : i32 to vector<2x128xi32>
    %40 = arith.cmpi eq, %22, %39 : vector<2x128xi32>
    %c0_i32_31 = arith.constant 0 : i32
    %41 = vector.broadcast %c0_i32_31 : i32 to vector<2x128xi32>
    %42 = arith.select %40, %28, %41 : vector<2x128xi1>, vector<2x128xi32>
    %c0_32 = arith.constant 0 : index
    %c0_33 = arith.constant 0 : index
    %c1_34 = arith.constant 1 : index
    %c0_35 = arith.constant 0 : index
    %c0_36 = arith.constant 0 : index
    %43 = vector.load %arg5[%c0_32, %c0_33, %c1_34, %c0_35, %c0_36] : memref<1x1x4x2x128xi32, #tpu.memory_space<vmem>>, vector<1x1x1x2x128xi32>
    %44 = vector.shape_cast %43 : vector<1x1x1x2x128xi32> to vector<2x128xi32>
    %45 = arith.addi %44, %42 : vector<2x128xi32>
    %c0_37 = arith.constant 0 : index
    %c0_38 = arith.constant 0 : index
    %c1_39 = arith.constant 1 : index
    %c0_40 = arith.constant 0 : index
    %c0_41 = arith.constant 0 : index
    %46 = vector.load %arg5[%c0_37, %c0_38, %c1_39, %c0_40, %c0_41] : memref<1x1x4x2x128xi32, #tpu.memory_space<vmem>>, vector<1x1x1x2x128xi32>
    %47 = vector.shape_cast %46 : vector<1x1x1x2x128xi32> to vector<2x128xi32>
    %48 = vector.shape_cast %45 : vector<2x128xi32> to vector<1x1x1x2x128xi32>
    tpu.vector_store %arg5[%c0_37, %c0_38, %c1_39, %c0_40, %c0_41], %48 {strides = array<i32>} : memref<1x1x4x2x128xi32, #tpu.memory_space<vmem>>, vector<1x1x1x2x128xi32>,
    %c2_i32_42 = arith.constant 2 : i32
    %49 = vector.broadcast %c2_i32_42 : i32 to vector<2x128xi32>
    %50 = arith.cmpi eq, %22, %49 : vector<2x128xi32>
    %c0_i32_43 = arith.constant 0 : i32
    %51 = vector.broadcast %c0_i32_43 : i32 to vector<2x128xi32>
    %52 = arith.select %50, %28, %51 : vector<2x128xi1>, vector<2x128xi32>
    %c0_44 = arith.constant 0 : index
    %c0_45 = arith.constant 0 : index
    %c2_46 = arith.constant 2 : index
    %c0_47 = arith.constant 0 : index
    %c0_48 = arith.constant 0 : index
    %53 = vector.load %arg5[%c0_44, %c0_45, %c2_46, %c0_47, %c0_48] : memref<1x1x4x2x128xi32, #tpu.memory_space<vmem>>, vector<1x1x1x2x128xi32>
    %54 = vector.shape_cast %53 : vector<1x1x1x2x128xi32> to vector<2x128xi32>
    %55 = arith.addi %54, %52 : vector<2x128xi32>
    %c0_49 = arith.constant 0 : index
    %c0_50 = arith.constant 0 : index
    %c2_51 = arith.constant 2 : index
    %c0_52 = arith.constant 0 : index
    %c0_53 = arith.constant 0 : index
    %56 = vector.load %arg5[%c0_49, %c0_50, %c2_51, %c0_52, %c0_53] : memref<1x1x4x2x128xi32, #tpu.memory_space<vmem>>, vector<1x1x1x2x128xi32>
    %57 = vector.shape_cast %56 : vector<1x1x1x2x128xi32> to vector<2x128xi32>
    %58 = vector.shape_cast %55 : vector<2x128xi32> to vector<1x1x1x2x128xi32>
    tpu.vector_store %arg5[%c0_49, %c0_50, %c2_51, %c0_52, %c0_53], %58 {strides = array<i32>} : memref<1x1x4x2x128xi32, #tpu.memory_space<vmem>>, vector<1x1x1x2x128xi32>,
    %c3_i32_54 = arith.constant 3 : i32
    %59 = vector.broadcast %c3_i32_54 : i32 to vector<2x128xi32>
    %60 = arith.cmpi eq, %22, %59 : vector<2x128xi32>
    %c0_i32_55 = arith.constant 0 : i32
    %61 = vector.broadcast %c0_i32_55 : i32 to vector<2x128xi32>
    %62 = arith.select %60, %28, %61 : vector<2x128xi1>, vector<2x128xi32>
    %c0_56 = arith.constant 0 : index
    %c0_57 = arith.constant 0 : index
    %c3_58 = arith.constant 3 : index
    %c0_59 = arith.constant 0 : index
    %c0_60 = arith.constant 0 : index
    %63 = vector.load %arg5[%c0_56, %c0_57, %c3_58, %c0_59, %c0_60] : memref<1x1x4x2x128xi32, #tpu.memory_space<vmem>>, vector<1x1x1x2x128xi32>
    %64 = vector.shape_cast %63 : vector<1x1x1x2x128xi32> to vector<2x128xi32>
    %65 = arith.addi %64, %62 : vector<2x128xi32>
    %c0_61 = arith.constant 0 : index
    %c0_62 = arith.constant 0 : index
    %c3_63 = arith.constant 3 : index
    %c0_64 = arith.constant 0 : index
    %c0_65 = arith.constant 0 : index
    %66 = vector.load %arg5[%c0_61, %c0_62, %c3_63, %c0_64, %c0_65] : memref<1x1x4x2x128xi32, #tpu.memory_space<vmem>>, vector<1x1x1x2x128xi32>
    %67 = vector.shape_cast %66 : vector<1x1x1x2x128xi32> to vector<2x128xi32>
    %68 = vector.shape_cast %65 : vector<2x128xi32> to vector<1x1x1x2x128xi32>
    tpu.vector_store %arg5[%c0_61, %c0_62, %c3_63, %c0_64, %c0_65], %68 {strides = array<i32>} : memref<1x1x4x2x128xi32, #tpu.memory_space<vmem>>, vector<1x1x1x2x128xi32>,
    return
  }
  func.func @transform_0(%arg0: i32, %arg1: i32, %arg2: i32) -> (i32, i32, i32, i32) {
    %c1_i32 = arith.constant 1 : i32
    %0 = arith.muli %arg1, %c1_i32 : i32
    %1 = arith.addi %0, %arg2 : i32
    %c0_i32 = arith.constant 0 : i32
    %c0_i32_0 = arith.constant 0 : i32
    %c0_i32_1 = arith.constant 0 : i32
    return %arg0, %c0_i32, %1, %c0_i32_0 : i32, i32, i32, i32
  }
  func.func @transform_1(%arg0: i32, %arg1: i32, %arg2: i32) -> (i32, i32, i32) {
    %c1_i32 = arith.constant 1 : i32
    %0 = arith.muli %arg1, %c1_i32 : i32
    %1 = arith.addi %0, %arg2 : i32
    %c0_i32 = arith.constant 0 : i32
    %c0_i32_0 = arith.constant 0 : i32
    return %arg0, %1, %c0_i32 : i32, i32, i32
  }
  func.func @transform_2(%arg0: i32, %arg1: i32, %arg2: i32) -> (i32, i32, i32, i32, i32) {
    %c0_i32 = arith.constant 0 : i32
    %c0_i32_0 = arith.constant 0 : i32
    %c0_i32_1 = arith.constant 0 : i32
    %c0_i32_2 = arith.constant 0 : i32
    return %arg0, %arg1, %c0_i32, %c0_i32_0, %c0_i32_1 : i32, i32, i32, i32, i32
  }
}

</mosaic_0001>

<bundles_post_ra>
// kernel: seg_precision_metric.1
= control target key start
LH: loop header
LB: loop body
LE: loop exit
PB: predicated region body
PF: predicated region fallthrough
CT: control target
= control target key end

     0   :  { %s472_s9 = smov 0   ;;  %s474_s10 = smov 0   ;;  %s522_s0 = inlined_call_operand.vmem [shape: f32[2,4,2,128], index: 0, kind: input, shape index: {}]   ;;  %s523_s1 = inlined_call_operand.vmem [shape: s32[2,2,128], index: 1, kind: input, shape index: {}]   ;;  %s524_s2 = inlined_call_operand.vmem [shape: s32[2,1,4,2,128], index: 2, kind: output, shape index: {}]  }
   0x1   :  { %s476_s11 = smov 0  }
   0x2 LB: > { %s31_s12 = sadd.s32 1, %s449_s10  ;;  %p386_p0 = scmp.ge.s32.totalorder %s453_s11, 1  ;;  %s453_s11 = sphi %s476_s11, %s12_s11   ;;  %s449_s10 = sphi %s474_s10, %s526_s10   ;;  %s445_s9 = sphi %s472_s9, %s525_s9  }
   0x3   : > { %p33_p1 = scmp.ge.s32.totalorder %s31_s12, 2  ;;  %p160_p2 = scmp.lt.s32.totalorder %s453_s11, 3 }
   0x5   : > { %s528_s12 = smov (%p33_p1, %s31_s12), 0  ;;  %p161_p3 = pnand %p386_p0, %p160_p2 }
   0x6   : > { %p199_p4 = scmp.lt.s32.totalorder (!%p161_p3), %s445_s9, 1 }
   0x7   : > { %164 = sbr.rel (%p161_p3) target bundleno = 29 (0x1d), region = 28 }
   0xc   : > { %s530_s9 = smov (!%p199_p4, %s445_s9), 1  ;;  %v455_v0 = vmov 0   ;;  %v456_v13 = vmov 1  }
   0xd   : > { %s403_s13 = sshll.u32 %s530_s9, 3  ;;  %s389_s14 = sshll.u32 %s530_s9, 1 }
   0xe   : > { %s206_s17 = scalar_lea.vmem %s522_s0, %s403_s13  ;;  %s496_s20 = scalar_lea.vmem %s524_s2, %s403_s13 }
   0xf   : > { %230 = vst [vmem:[%s496_s20] sm:$0x3] %v455_v0  ;;  %v234_v1 = vld [vmem:[%s206_s17] sm:$0x3]  ;;  %v392_v2 = vld [vmem:[%s206_s17 + $0x2] sm:$0x3]  ;;  %s215_s23 = scalar_lea.vmem %s523_s1, %s389_s14 }
  0x10   : > { %v393_v3 = vld [vmem:[%s206_s17 + $0x4] sm:$0x3]  ;;  %231 = vst [vmem:[%s496_s20 + $0x2] sm:$0x3] %v455_v0  ;;  %232 = vst [vmem:[%s496_s20 + $0x4] sm:$0x3] %v455_v0  ;;  %vm237_vm0 = vcmp.gt.f32.partialorder %v392_v2, %v234_v1 }
  0x11   : > { %233 = vst [vmem:[%s496_s20 + $0x6] sm:$0x3] %v455_v0  ;;  %v238_v4 = vsel %vm237_vm0, 1, %v455_v0  ;;  %v239_v5 = vsel %vm237_vm0, %v392_v2, %v234_v1  ;;  %v394_v6 = vld [vmem:[%s206_s17 + $0x6] sm:$0x3] }
  0x12   : > { %vm242_vm1 = vcmp.gt.f32.partialorder %v393_v3, %v239_v5  ;;  %v249_v9 = vld [vmem:[%s215_s23] sm:$0x3] }
  0x13   : > { %v243_v7 = vsel %vm242_vm1, 2, %v238_v4  ;;  %v244_v8 = vsel %vm242_vm1, %v393_v3, %v239_v5 }
  0x14   : > { %vm247_vm2 = vcmp.gt.f32.partialorder %v394_v6, %v244_v8 }
  0x15   : > { %v248_v10 = vsel %vm247_vm2, 3, %v243_v7 }
  0x16   : > { %vm250_vm3 = vcmp.eq.s32.totalorder %v249_v9, %v248_v10  ;;  %vm252_vm4 = vcmp.eq.s32.totalorder %v248_v10, 0  ;;  %v254_v11 = vld [vmem:[%s496_s20] sm:$0x3]  ;;  %vm257_vm5 = vcmp.eq.s32.totalorder %v248_v10, 1  ;;  %vm263_vm6 = vcmp.eq.s32.totalorder %v248_v10, 2 }
  0x17   : > { %v395_v12 = vld [vmem:[%s496_s20 + $0x2] sm:$0x3]  ;;  %v251_v14 = vsel %vm250_vm3, 65537, %v456_v13  ;;  %v397_v15 = vld [vmem:[%s496_s20 + $0x4] sm:$0x3]  ;;  %vm269_vm7 = vcmp.eq.s32.totalorder %v248_v10, 3 }
  0x18   : > { %v253_v16 = vsel %vm252_vm4, %v251_v14, 0  ;;  %v258_v17 = vsel %vm257_vm5, %v251_v14, 0  ;;  %v264_v18 = vsel %vm263_vm6, %v251_v14, 0  ;;  %v270_v19 = vsel %vm269_vm7, %v251_v14, 0  ;;  %v399_v20 = vld [vmem:[%s496_s20 + $0x6] sm:$0x3] }
  0x19   : > { %v255_v21 = vadd.s32 %v254_v11, %v253_v16  ;;  %v261_v22 = vadd.s32 %v395_v12, %v258_v17  ;;  %v267_v23 = vadd.s32 %v397_v15, %v264_v18  ;;  %v273_v24 = vadd.s32 %v399_v20, %v270_v19 }
  0x1b   : > { %256 = vst [vmem:[%s496_s20] sm:$0x3] %v255_v21  ;;  %396 = vst [vmem:[%s496_s20 + $0x2] sm:$0x3] %v261_v22 }
  0x1c   : > { %398 = vst [vmem:[%s496_s20 + $0x4] sm:$0x3] %v267_v23  ;;  %400 = vst [vmem:[%s496_s20 + $0x6] sm:$0x3] %v273_v24 }
  0x1d PF: > { %s12_s11 = sadd.s32 1, %s453_s11   ;;  %s525_s9 = smov %s449_s10 }
  0x1e   : > { %p9_p5 = scmp.ge.s32.totalorder %s12_s11, 4   ;;  %s526_s10 = smov %s528_s12 }
  0x20   :  { %11 = sbr.rel (!%p9_p5) target bundleno = 2 (0x2), region = 71 }

</bundles_post_ra>
